<compile_context>
chip_gen: v5e
topology: v5e:2x2
jax: 0.10.0
libtpu: 0.0.40
codegen_flags: <defaults>
</compile_context>

<pallas_src>
import functools

import jax
import jax.numpy as jnp
from jax.experimental import pallas as pl
from jax.experimental.pallas import tpu as pltpu

_NEG_BIG = -1e30  # finite "-inf": keeps the online-softmax recurrence NaN-free


def _round_up(x, m):
    return (x + m - 1) // m * m


def _soft_dot_kernel(has_mask, *refs):
    if has_mask:
        (target_ref, hproj_ref, wout_ctx_ref, ctx_ref, mask_ref,
         lang_ref, attn_ref, m_scr, l_scr, acc_scr) = refs
    else:
        (target_ref, hproj_ref, wout_ctx_ref, ctx_ref,
         lang_ref, attn_ref, m_scr, l_scr, acc_scr) = refs
        mask_ref = None

    s_idx = pl.program_id(1)
    n_s = pl.num_programs(1)
    s_tile = ctx_ref.shape[1]

    @pl.when(s_idx == 0)
    def _init():
        m_scr[...] = jnp.full_like(m_scr, _NEG_BIG)
        l_scr[...] = jnp.zeros_like(l_scr)
        acc_scr[...] = jnp.zeros_like(acc_scr)

    # Context block stays in its stored dtype (bf16 default) — no upcast;
    # the MXU einsums accumulate in f32 via preferred_element_type.
    ctx = ctx_ref[...]                                    # (b, s_tile, D)
    tq = target_ref[...]                                  # (b, 1, D), same dtype

    # attention logits on the MXU: (b,1,D) x (b,s,D) -> (b,1,s) -> (b,s)
    logits = jnp.einsum('bqd,bkd->bqk', tq, ctx,
                        preferred_element_type=jnp.float32)[:, 0, :]
    if has_mask:
        logits = jnp.where(mask_ref[...] != 0, _NEG_BIG, logits)

    # online softmax update
    m_old = m_scr[...]                                    # (b, 1)
    m_new = jnp.maximum(m_old, jnp.max(logits, axis=-1, keepdims=True))
    corr = jnp.exp(m_old - m_new)
    p = jnp.exp(logits - m_new)                           # (b, s_tile) f32
    l_scr[...] = corr * l_scr[...] + jnp.sum(p, axis=-1, keepdims=True)
    # weighted context on the MXU: (b,1,s) x (b,s,D) -> (b,1,D) -> (b,D)
    pv = jnp.einsum('bqk,bkd->bqd', p.astype(ctx.dtype)[:, None, :], ctx,
                    preferred_element_type=jnp.float32)[:, 0, :]
    acc_scr[...] = corr * acc_scr[...] + pv
    m_scr[...] = m_new

    # stash raw (masked) logits in the S-resident attn output block.
    col = pl.multiple_of(s_idx * s_tile, s_tile)
    attn_ref[:, pl.ds(col, s_tile)] = logits

    @pl.when(s_idx == n_s - 1)
    def _finalize():
        inv_l = pl.reciprocal(l_scr[...], approx=True)    # EUP slot, ~free
        attn_ref[...] = jnp.exp(attn_ref[...] - m_scr[...]) * inv_l
        wctx = acc_scr[...] * inv_l                       # (b, D) f32
        # lang = tanh( wctx @ W_out[:, :D]^T + h @ W_out[:, D:]^T )
        proj = jax.lax.dot_general(
            wctx, wout_ctx_ref[...],
            dimension_numbers=(((1,), (1,)), ((), ())),
            preferred_element_type=jnp.float32)
        lang_ref[...] = jnp.tanh(proj + hproj_ref[...]).astype(lang_ref.dtype)


def soft_dot_attention(h, context, w_in, w_out, mask=None, *,
                       b_tile=16, s_tile=1024, context_dtype=jnp.bfloat16):
    """h: (B, D); context: (B, S, D); w_in: (D, D) = linear_in.weight;
    w_out: (D, 2D) = linear_out.weight; mask: optional (B, S), nonzero = masked.
    Returns (lang_embeds (B, D), attn (B, S)), float32.

    context is streamed through the kernel in `context_dtype` (bf16 default:
    half the HBM traffic; expect ~1e-2-level deviations vs an f32 reference)."""
    B, D = h.shape
    _, S, _ = context.shape

    h32 = h.astype(jnp.float32)
    w_in32 = w_in.astype(jnp.float32)
    w_out32 = w_out.astype(jnp.float32)

    # Tiny per-call matmuls hoisted out of the kernel; contraction on
    # in_features means no transposed-weight copies are materialized.
    target = jnp.einsum('bd,ed->be', h32, w_in32)            # h @ W_in^T
    h_proj = jnp.einsum('bd,ed->be', h32, w_out32[:, D:])    # h @ W_out[:, D:]^T
    w_out_ctx = w_out32[:, :D]                               # (D, D), out x in

    # Lane/sublane-dense padded sizes.
    D_pad = _round_up(D, 128)

    B_pad8 = _round_up(B, 8)
    bt = _round_up(min(b_tile, B_pad8), 8)
    if B_pad8 >= 16:
        # keep >= 2 batch tiles so the "parallel" axis splits across v7x's 2 TCs
        bt = min(bt, _round_up(B_pad8 // 2, 8))
    b_tile = bt
    B_pad = _round_up(B_pad8, b_tile)

    S_pad128 = _round_up(S, 128)
    s_tile = _round_up(min(s_tile, S_pad128), 128)
    if S % s_tile != 0:
        # prefer an s_tile that divides S: skips the full-copy pad of context
        for cand in range(s_tile, 255, -128):
            if S % cand == 0:
                s_tile = cand
                break
    S_pad = _round_up(S, s_tile)
    n_b, n_s = B_pad // b_tile, S_pad // s_tile

    def pad_to(x, shape):
        if tuple(x.shape) == tuple(shape):
            return x
        return jnp.pad(x, [(0, t - s) for s, t in zip(x.shape, shape)])

    target_p = pad_to(target.astype(context_dtype)[:, None, :],
                      (B_pad, 1, D_pad))
    h_proj_p = pad_to(h_proj, (B_pad, D_pad))
    w_out_ctx_p = pad_to(w_out_ctx, (D_pad, D_pad))
    # Accept pre-cast bf16 context (no extra copy); pad only when needed.
    ctx_cast = context if context.dtype == jnp.dtype(context_dtype) \
        else context.astype(context_dtype)
    ctx_p = pad_to(ctx_cast, (B_pad, S_pad, D_pad))

    # A mask block is only shipped when the user supplied one or S needed
    # padding (padded seq positions must get zero softmax weight).  Padded
    # batch rows need no mask (their outputs are sliced away).
    has_mask = (mask is not None) or (S_pad != S)
    inputs = [target_p, h_proj_p, w_out_ctx_p, ctx_p]
    in_specs = [
        pl.BlockSpec((b_tile, 1, D_pad), lambda b, s: (b, 0, 0)),
        pl.BlockSpec((b_tile, D_pad), lambda b, s: (b, 0)),
        pl.BlockSpec((D_pad, D_pad), lambda b, s: (0, 0)),
        pl.BlockSpec((b_tile, s_tile, D_pad), lambda b, s: (b, s, 0)),
    ]
    if has_mask:
        user = (jnp.zeros((B, S), jnp.int32) if mask is None
                else mask.astype(jnp.int32))
        mask_p = jnp.pad(user, ((0, B_pad - B), (0, S_pad - S)),
                         constant_values=1)
        inputs.append(mask_p)
        in_specs.append(pl.BlockSpec((b_tile, s_tile), lambda b, s: (b, s)))

    # Generation-aware VMEM budget: double-buffered context + f32 softmax
    # temporaries + resident outputs, capped at ~80% of physical VMEM
    # (v7x: ~51 MiB of 64; v5e/v6e: ~102 MiB of 128).
    itemsize = jnp.dtype(context_dtype).itemsize
    est = (2 * b_tile * s_tile * D_pad * itemsize          # ctx double-buffered
           + 4 * b_tile * s_tile * 4                       # logits / p f32 temps
           + (2 * b_tile * s_tile * 4 if has_mask else 0)  # mask blocks
           + 2 * b_tile * S_pad * 4                        # resident attn block
           + 2 * b_tile * D_pad * (itemsize + 8)           # target/h_proj/lang
           + 2 * D_pad * D_pad * 4                         # w_out block
           + b_tile * D_pad * 4 + 2 * b_tile * 4           # scratch
           + (8 << 20))                                    # compiler headroom
    info = None
    try:
        info = pltpu.get_tpu_info()
    except Exception:
        pass
    phys = getattr(info, "vmem_capacity_bytes", None) or (128 << 20)
    cap = int(phys * 0.8)
    vmem_limit = int(min(max(est, 32 << 20), cap))

    lang_p, attn_p = pl.pallas_call(
        functools.partial(_soft_dot_kernel, has_mask),
        out_shape=(jax.ShapeDtypeStruct((B_pad, D_pad), jnp.float32),
                   jax.ShapeDtypeStruct((B_pad, S_pad), jnp.float32)),
        grid_spec=pltpu.PrefetchScalarGridSpec(
            num_scalar_prefetch=0,
            grid=(n_b, n_s),
            in_specs=in_specs,
            out_specs=[
                pl.BlockSpec((b_tile, D_pad), lambda b, s: (b, 0)),
                pl.BlockSpec((b_tile, S_pad), lambda b, s: (b, 0)),
            ],
            scratch_shapes=[
                pltpu.VMEM((b_tile, 1), jnp.float32),      # running max
                pltpu.VMEM((b_tile, 1), jnp.float32),      # running denom
                pltpu.VMEM((b_tile, D_pad), jnp.float32),  # weighted-ctx acc
            ]),
        compiler_params=pltpu.CompilerParams(
            dimension_semantics=("parallel", "arbitrary"),
            vmem_limit_bytes=vmem_limit),
    )(*inputs)

    return lang_p[:B, :D], attn_p[:B, :S]


def soft_dot_attention_ref(h, context, w_in, w_out, mask=None):
    """Pure-JAX reference mirroring the PyTorch forward."""
    target = jnp.einsum('bd,ed->be', h, w_in)               # (B, D)
    attn = jnp.einsum('bsd,bd->bs', context, target)        # (B, S)
    if mask is not None:
        attn = jnp.where(mask, -jnp.inf, attn)
    attn = jax.nn.softmax(attn, axis=1)
    wctx = jnp.einsum('bs,bsd->bd', attn, context)          # (B, D)
    lang = jnp.tanh(jnp.concatenate([wctx, h], axis=1) @ w_out.T)
    return lang, attn


if __name__ == "__main__":
    key = jax.random.PRNGKey(0)

    def make_inputs(B, S, D, with_mask, k):
        k_h, k_c, k_wi, k_wo, k_m = jax.random.split(k, 5)
        h = jax.random.normal(k_h, (B, D), jnp.float32)
        ctx = jax.random.normal(k_c, (B, S, D), jnp.float32)
        w_in = jax.random.normal(k_wi, (D, D), jnp.float32) / jnp.sqrt(D)
        w_out = jax.random.normal(k_wo, (D, 2 * D), jnp.float32) / jnp.sqrt(2 * D)
        mask = None
        if with_mask:
            mask = jax.random.bernoulli(k_m, 0.3, (B, S))
            mask = mask.at[:, 0].set(False)   # keep >=1 unmasked position/row
        return h, ctx, w_in, w_out, mask

    k1, k2, k3, k4 = jax.random.split(key, 4)
    checks = []

    # Cases 1/2: module-sized small shapes (dim=32), f32 context, w/o & w/ mask.
    for kk, with_mask in ((k1, False), (k2, True)):
        h, ctx, w_in, w_out, mask = make_inputs(2, 8, 32, with_mask, kk)
        lang, attn = soft_dot_attention(h, ctx, w_in, w_out, mask=mask,
                                        context_dtype=jnp.float32)
        jax.block_until_ready((lang, attn))
        lang_r, attn_r = soft_dot_attention_ref(h, ctx, w_in, w_out, mask=mask)
        checks.append(jnp.allclose(lang, lang_r, atol=5e-3, rtol=5e-3))
        checks.append(jnp.allclose(attn, attn_r, atol=5e-3, rtol=5e-3))

    # Case 3: multi-tile S (online softmax across several context blocks) + mask.
    h, ctx, w_in, w_out, mask = make_inputs(4, 300, 64, True, k3)
    lang, attn = soft_dot_attention(h, ctx, w_in, w_out, mask=mask,
                                    s_tile=128, context_dtype=jnp.float32)
    jax.block_until_ready((lang, attn))
    lang_r, attn_r = soft_dot_attention_ref(h, ctx, w_in, w_out, mask=mask)
    checks.append(jnp.allclose(lang, lang_r, atol=5e-3, rtol=5e-3))
    checks.append(jnp.allclose(attn, attn_r, atol=5e-3, rtol=5e-3))

    # Case 4: default bf16 context (HBM bytes halved), multi-tile S, no mask;
    # compared against a reference fed the same bf16-rounded context.
    h, ctx, w_in, w_out, _ = make_inputs(4, 256, 64, False, k4)
    lang, attn = soft_dot_attention(h, ctx, w_in, w_out, mask=None, s_tile=128)
    jax.block_until_ready((lang, attn))
    ctx_bf = ctx.astype(jnp.bfloat16).astype(jnp.float32)
    lang_r, attn_r = soft_dot_attention_ref(h, ctx_bf, w_in, w_out, mask=None)
    checks.append(jnp.allclose(lang, lang_r, atol=3e-2, rtol=3e-2))
    checks.append(jnp.allclose(attn, attn_r, atol=3e-2, rtol=3e-2))

    assert all(bool(c) for c in checks), checks
    print("KERNEL_OK")
</pallas_src>

<mosaic_0001>
module attributes {stable_mosaic.version = 11 : i64} {
  func.func @_soft_dot_kernel(%arg0: i32, %arg1: i32, %arg2: memref<8x1x128xf32, #tpu.memory_space<vmem>>, %arg3: memref<8x128xf32, #tpu.memory_space<vmem>>, %arg4: memref<128x128xf32, #tpu.memory_space<vmem>>, %arg5: memref<8x128x128xf32, #tpu.memory_space<vmem>>, %arg6: memref<8x128xi32, #tpu.memory_space<vmem>>, %arg7: memref<8x128xf32, #tpu.memory_space<vmem>>, %arg8: memref<8x128xf32, #tpu.memory_space<vmem>>, %arg9: memref<8x1xf32, #tpu.memory_space<vmem>>, %arg10: memref<8x1xf32, #tpu.memory_space<vmem>>, %arg11: memref<8x128xf32, #tpu.memory_space<vmem>>) attributes {dimension_semantics = [#tpu.dimension_semantics<parallel>, #tpu.dimension_semantics<arbitrary>], iteration_bounds = array<i64: 1, 1>, scalar_prefetch = 0 : i64, scratch_operands = 3 : i64, tpu.core_type = #tpu.core_type<tc>, window_params = [{transform_indices = @transform_0, window_bounds = array<i64: 8, 1, 128>}, {transform_indices = @transform_1, window_bounds = array<i64: 8, 128>}, {pipeline_mode = #tpu.pipeline_mode<synchronous>, transform_indices = @transform_2, window_bounds = array<i64: 128, 128>}, {transform_indices = @transform_3, window_bounds = array<i64: 8, 128, 128>}, {transform_indices = @transform_4, window_bounds = array<i64: 8, 128>}, {transform_indices = @transform_5, window_bounds = array<i64: 8, 128>}, {transform_indices = @transform_6, window_bounds = array<i64: 8, 128>}]} {
    %c0_i32 = arith.constant 0 : i32
    %0 = arith.cmpi eq, %arg1, %c0_i32 : i32
    %1 = arith.extui %0 : i1 to i32
    %c0_i32_0 = arith.constant 0 : i32
    %2 = arith.cmpi ne, %1, %c0_i32_0 : i32
    scf.if %2 {
      %cst_28 = arith.constant -1.000000e+30 : f32
      %43 = vector.broadcast %cst_28 : f32 to vector<8x1xf32>
      %c0_29 = arith.constant 0 : index
      %c0_30 = arith.constant 0 : index
      %44 = vector.load %arg9[%c0_29, %c0_30] : memref<8x1xf32, #tpu.memory_space<vmem>>, vector<8x1xf32>
      tpu.vector_store %arg9[%c0_29, %c0_30], %43 {strides = array<i32>} : memref<8x1xf32, #tpu.memory_space<vmem>>, vector<8x1xf32>,
      %cst_31 = arith.constant 0.000000e+00 : f32
      %45 = vector.broadcast %cst_31 : f32 to vector<8x1xf32>
      %c0_32 = arith.constant 0 : index
      %c0_33 = arith.constant 0 : index
      %46 = vector.load %arg10[%c0_32, %c0_33] : memref<8x1xf32, #tpu.memory_space<vmem>>, vector<8x1xf32>
      tpu.vector_store %arg10[%c0_32, %c0_33], %45 {strides = array<i32>} : memref<8x1xf32, #tpu.memory_space<vmem>>, vector<8x1xf32>,
      %cst_34 = arith.constant 0.000000e+00 : f32
      %47 = vector.broadcast %cst_34 : f32 to vector<8x128xf32>
      %c0_35 = arith.constant 0 : index
      %c0_36 = arith.constant 0 : index
      %48 = vector.load %arg11[%c0_35, %c0_36] : memref<8x128xf32, #tpu.memory_space<vmem>>, vector<8x128xf32>
      tpu.vector_store %arg11[%c0_35, %c0_36], %47 {strides = array<i32>} : memref<8x128xf32, #tpu.memory_space<vmem>>, vector<8x128xf32>,
    } else {
    }
    %c0 = arith.constant 0 : index
    %c0_1 = arith.constant 0 : index
    %c0_2 = arith.constant 0 : index
    %3 = vector.load %arg5[%c0, %c0_1, %c0_2] : memref<8x128x128xf32, #tpu.memory_space<vmem>>, vector<8x128x128xf32>
    %c0_3 = arith.constant 0 : index
    %c0_4 = arith.constant 0 : index
    %c0_5 = arith.constant 0 : index
    %4 = vector.load %arg2[%c0_3, %c0_4, %c0_5] : memref<8x1x128xf32, #tpu.memory_space<vmem>>, vector<8x1x128xf32>
    "tpu.trace_start"() <{level = 10 : i32, message = "bqd,bkd->bqk"}> : () -> ()
    %cst = arith.constant dense<0.000000e+00> : vector<8x1x128xf32>
    %5 = tpu.matmul %4, %3, %cst {dimension_numbers = #tpu.dot_dimension_numbers<[2], [2], [1], [1], [0, 0, 0, 1, 1, 1], [0], [0]>} : vector<8x1x128xf32>, vector<8x128x128xf32>, vector<8x1x128xf32> -> vector<8x1x128xf32>
    "tpu.trace_stop"() : () -> ()
    %6 = vector.shape_cast %5 : vector<8x1x128xf32> to vector<8x128xf32>
    %c0_6 = arith.constant 0 : index
    %c0_7 = arith.constant 0 : index
    %7 = vector.load %arg6[%c0_6, %c0_7] : memref<8x128xi32, #tpu.memory_space<vmem>>, vector<8x128xi32>
    %c0_i32_8 = arith.constant 0 : i32
    %8 = vector.broadcast %c0_i32_8 : i32 to vector<8x128xi32>
    %9 = arith.cmpi ne, %7, %8 : vector<8x128xi32>
    %cst_9 = arith.constant -1.000000e+30 : f32
    %10 = vector.broadcast %cst_9 : f32 to vector<8x128xf32>
    %11 = arith.select %9, %10, %6 : vector<8x128xi1>, vector<8x128xf32>
    %c0_10 = arith.constant 0 : index
    %c0_11 = arith.constant 0 : index
    %12 = vector.load %arg9[%c0_10, %c0_11] : memref<8x1xf32, #tpu.memory_space<vmem>>, vector<8x1xf32>
    %cst_12 = arith.constant dense<0xFF800000> : vector<8xf32>
    %13 = vector.multi_reduction <maximumf>, %11, %cst_12 [1] : vector<8x128xf32> to vector<8xf32>
    %14 = vector.shape_cast %13 : vector<8xf32> to vector<8x1xf32>
    %15 = arith.maximumf %12, %14 : vector<8x1xf32>
    %16 = arith.subf %12, %15 : vector<8x1xf32>
    %17 = math.exp %16 : vector<8x1xf32>
    %18 = vector.broadcast %15 : vector<8x1xf32> to vector<8x128xf32>
    %19 = arith.subf %11, %18 : vector<8x128xf32>
    %20 = math.exp %19 : vector<8x128xf32>
    %c0_13 = arith.constant 0 : index
    %c0_14 = arith.constant 0 : index
    %21 = vector.load %arg10[%c0_13, %c0_14] : memref<8x1xf32, #tpu.memory_space<vmem>>, vector<8x1xf32>
    %22 = arith.mulf %17, %21 : vector<8x1xf32>
    %cst_15 = arith.constant dense<0.000000e+00> : vector<8xf32>
    %23 = vector.multi_reduction <add>, %20, %cst_15 [1] : vector<8x128xf32> to vector<8xf32>
    %24 = vector.shape_cast %23 : vector<8xf32> to vector<8x1xf32>
    %25 = arith.addf %22, %24 : vector<8x1xf32>
    %c0_16 = arith.constant 0 : index
    %c0_17 = arith.constant 0 : index
    %26 = vector.load %arg10[%c0_16, %c0_17] : memref<8x1xf32, #tpu.memory_space<vmem>>, vector<8x1xf32>
    tpu.vector_store %arg10[%c0_16, %c0_17], %25 {strides = array<i32>} : memref<8x1xf32, #tpu.memory_space<vmem>>, vector<8x1xf32>,
    %27 = vector.shape_cast %20 : vector<8x128xf32> to vector<8x1x128xf32>
    "tpu.trace_start"() <{level = 10 : i32, message = "bqk,bkd->bqd"}> : () -> ()
    %cst_18 = arith.constant dense<0.000000e+00> : vector<8x1x128xf32>
    %28 = tpu.matmul %27, %3, %cst_18 {dimension_numbers = #tpu.dot_dimension_numbers<[2], [1], [1], [2], [0, 0, 0, 1, 1, 2], [0], [0]>} : vector<8x1x128xf32>, vector<8x128x128xf32>, vector<8x1x128xf32> -> vector<8x1x128xf32>
    "tpu.trace_stop"() : () -> ()
    %29 = vector.shape_cast %28 : vector<8x1x128xf32> to vector<8x128xf32>
    %c0_19 = arith.constant 0 : index
    %c0_20 = arith.constant 0 : index
    %30 = vector.load %arg11[%c0_19, %c0_20] : memref<8x128xf32, #tpu.memory_space<vmem>>, vector<8x128xf32>
    %31 = vector.broadcast %17 : vector<8x1xf32> to vector<8x128xf32>
    %32 = arith.mulf %31, %30 : vector<8x128xf32>
    %33 = arith.addf %32, %29 : vector<8x128xf32>
    %c0_21 = arith.constant 0 : index
    %c0_22 = arith.constant 0 : index
    %34 = vector.load %arg11[%c0_21, %c0_22] : memref<8x128xf32, #tpu.memory_space<vmem>>, vector<8x128xf32>
    tpu.vector_store %arg11[%c0_21, %c0_22], %33 {strides = array<i32>} : memref<8x128xf32, #tpu.memory_space<vmem>>, vector<8x128xf32>,
    %c0_23 = arith.constant 0 : index
    %c0_24 = arith.constant 0 : index
    %35 = vector.load %arg9[%c0_23, %c0_24] : memref<8x1xf32, #tpu.memory_space<vmem>>, vector<8x1xf32>
    tpu.vector_store %arg9[%c0_23, %c0_24], %15 {strides = array<i32>} : memref<8x1xf32, #tpu.memory_space<vmem>>, vector<8x1xf32>,
    %c128_i32 = arith.constant 128 : i32
    %36 = arith.muli %arg1, %c128_i32 : i32
    %37 = tpu.assume_multiple %36, 128 : i32
    %c0_25 = arith.constant 0 : index
    %38 = arith.index_cast %37 : i32 to index
    %39 = vector.load %arg8[%c0_25, %38] : memref<8x128xf32, #tpu.memory_space<vmem>>, vector<8x128xf32>
    tpu.vector_store %arg8[%c0_25, %38], %11 {strides = array<i32>} : memref<8x128xf32, #tpu.memory_space<vmem>>, vector<8x128xf32>,
    %c0_i32_26 = arith.constant 0 : i32
    %40 = arith.cmpi eq, %arg1, %c0_i32_26 : i32
    %41 = arith.extui %40 : i1 to i32
    %c0_i32_27 = arith.constant 0 : i32
    %42 = arith.cmpi ne, %41, %c0_i32_27 : i32
    scf.if %42 {
      %c0_28 = arith.constant 0 : index
      %c0_29 = arith.constant 0 : index
      %43 = vector.load %arg10[%c0_28, %c0_29] : memref<8x1xf32, #tpu.memory_space<vmem>>, vector<8x1xf32>
      %44 = tpu.reciprocal %43 {approx = true} : vector<8x1xf32> -> vector<8x1xf32>
      %c0_30 = arith.constant 0 : index
      %c0_31 = arith.constant 0 : index
      %45 = vector.load %arg8[%c0_30, %c0_31] : memref<8x128xf32, #tpu.memory_space<vmem>>, vector<8x128xf32>
      %c0_32 = arith.constant 0 : index
      %c0_33 = arith.constant 0 : index
      %46 = vector.load %arg9[%c0_32, %c0_33] : memref<8x1xf32, #tpu.memory_space<vmem>>, vector<8x1xf32>
      %47 = vector.broadcast %46 : vector<8x1xf32> to vector<8x128xf32>
      %48 = arith.subf %45, %47 : vector<8x128xf32>
      %49 = math.exp %48 : vector<8x128xf32>
      %50 = vector.broadcast %44 : vector<8x1xf32> to vector<8x128xf32>
      %51 = arith.mulf %49, %50 : vector<8x128xf32>
      %c0_34 = arith.constant 0 : index
      %c0_35 = arith.constant 0 : index
      %52 = vector.load %arg8[%c0_34, %c0_35] : memref<8x128xf32, #tpu.memory_space<vmem>>, vector<8x128xf32>
      tpu.vector_store %arg8[%c0_34, %c0_35], %51 {strides = array<i32>} : memref<8x128xf32, #tpu.memory_space<vmem>>, vector<8x128xf32>,
      %c0_36 = arith.constant 0 : index
      %c0_37 = arith.constant 0 : index
      %53 = vector.load %arg11[%c0_36, %c0_37] : memref<8x128xf32, #tpu.memory_space<vmem>>, vector<8x128xf32>
      %54 = vector.broadcast %44 : vector<8x1xf32> to vector<8x128xf32>
      %55 = arith.mulf %53, %54 : vector<8x128xf32>
      %c0_38 = arith.constant 0 : index
      %c0_39 = arith.constant 0 : index
      %56 = vector.load %arg4[%c0_38, %c0_39] : memref<128x128xf32, #tpu.memory_space<vmem>>, vector<128x128xf32>
      %cst_40 = arith.constant dense<0.000000e+00> : vector<8x128xf32>
      %57 = tpu.matmul %55, %56, %cst_40 {dimension_numbers = #tpu.dot_dimension_numbers<[1], [1], [0], [0], [0, 0, 1, 0], [], []>} : vector<8x128xf32>, vector<128x128xf32>, vector<8x128xf32> -> vector<8x128xf32>
      %c0_41 = arith.constant 0 : index
      %c0_42 = arith.constant 0 : index
      %58 = vector.load %arg3[%c0_41, %c0_42] : memref<8x128xf32, #tpu.memory_space<vmem>>, vector<8x128xf32>
      %59 = arith.addf %57, %58 : vector<8x128xf32>
      %60 = math.tanh %59 : vector<8x128xf32>
      %c0_43 = arith.constant 0 : index
      %c0_44 = arith.constant 0 : index
      %61 = vector.load %arg7[%c0_43, %c0_44] : memref<8x128xf32, #tpu.memory_space<vmem>>, vector<8x128xf32>
      tpu.vector_store %arg7[%c0_43, %c0_44], %60 {strides = array<i32>} : memref<8x128xf32, #tpu.memory_space<vmem>>, vector<8x128xf32>,
    } else {
    }
    return
  }
  func.func @transform_0(%arg0: i32, %arg1: i32) -> (i32, i32, i32) {
    %c0_i32 = arith.constant 0 : i32
    %c0_i32_0 = arith.constant 0 : i32
    %c0_i32_1 = arith.constant 0 : i32
    return %arg0, %c0_i32, %c0_i32_0 : i32, i32, i32
  }
  func.func @transform_1(%arg0: i32, %arg1: i32) -> (i32, i32) {
    %c0_i32 = arith.constant 0 : i32
    %c0_i32_0 = arith.constant 0 : i32
    return %arg0, %c0_i32 : i32, i32
  }
  func.func @transform_2(%arg0: i32, %arg1: i32) -> (i32, i32) {
    %c0_i32 = arith.constant 0 : i32
    %c0_i32_0 = arith.constant 0 : i32
    %c0_i32_1 = arith.constant 0 : i32
    return %c0_i32, %c0_i32_0 : i32, i32
  }
  func.func @transform_3(%arg0: i32, %arg1: i32) -> (i32, i32, i32) {
    %c0_i32 = arith.constant 0 : i32
    %c0_i32_0 = arith.constant 0 : i32
    return %arg0, %arg1, %c0_i32 : i32, i32, i32
  }
  func.func @transform_4(%arg0: i32, %arg1: i32) -> (i32, i32) {
    %c0_i32 = arith.constant 0 : i32
    return %arg0, %arg1 : i32, i32
  }
  func.func @transform_5(%arg0: i32, %arg1: i32) -> (i32, i32) {
    %c0_i32 = arith.constant 0 : i32
    %c0_i32_0 = arith.constant 0 : i32
    return %arg0, %c0_i32 : i32, i32
  }
  func.func @transform_6(%arg0: i32, %arg1: i32) -> (i32, i32) {
    %c0_i32 = arith.constant 0 : i32
    %c0_i32_0 = arith.constant 0 : i32
    return %arg0, %c0_i32 : i32, i32
  }
}

</mosaic_0001>

<bundles_post_ra>
// kernel: tpu_custom_call.1
= control target key start
LH: loop header
LB: loop body
LE: loop exit
PB: predicated region body
PF: predicated region fallthrough
CT: control target
= control target key end

     0   :  { %12 = vsyncpa [#allocation6], 0  ;;  %s1579_s0 = inlined_call_operand.hbm [shape: f32[8,1,128], index: 0, kind: input, shape index: {}]   ;;  %s1580_s1 = inlined_call_operand.hbm [shape: f32[8,128], index: 1, kind: input, shape index: {}]   ;;  %s1581_s2 = inlined_call_operand.hbm [shape: f32[128,128], index: 2, kind: input, shape index: {}]   ;;  %s1582_s3 = inlined_call_operand.hbm [shape: f32[8,128,128], index: 3, kind: input, shape index: {}]   ;;  %s1583_s4 = inlined_call_operand.hbm [shape: s32[8,128], index: 4, kind: input, shape index: {}]   ;;  %s1584_s5 = inlined_call_operand.hbm [shape: f32[8,128], index: 5, kind: output, shape index: {0}]   ;;  %s1585_s6 = inlined_call_operand.hbm [shape: f32[8,128], index: 6, kind: output, shape index: {1}]  }
   0x1   :  { %13 = vsyncpa [#allocation9], 0 }
   0x2   :  { %14 = vsyncpa [#allocation12], 0 }
   0x3   :  { %15 = vsyncpa [#allocation7], 0  ;;  %s35_s23 = sshll.u32 %s1580_s1, 4  ;;  %s36_s23 = int_to_ptr.hbm [resolvable:$true] %s35_s23 }
   0x4   :  { %16 = vsyncpa [#allocation16], 0  ;;  %s974_s24 = smov [#allocation8]   ;;  %s58_s28 = sshll.u32 %s1582_s3, 4  ;;  %s59_s28 = int_to_ptr.hbm [resolvable:$true] %s58_s28 }
   0x5   :  { %s37_s25 = sshll.u32 %s974_s24, 4  ;;  %s975_s29 = smov [#allocation11]   ;;  %s38_s25 = int_to_ptr.vmem [resolvable:$true] %s37_s25 }
   0x6   :  { %40 = dma.hbm_to_vmem [thread:$0]  %s36_s23, 128, %s38_s25, [#allocation9]  }
   0x7   :  { %s60_s30 = sshll.u32 %s975_s29, 4  ;;  %s21_s9 = sshll.u32 %s1579_s0, 4  ;;  %s61_s30 = int_to_ptr.vmem [resolvable:$true] %s60_s30  ;;  %s22_s9 = int_to_ptr.hbm [resolvable:$true] %s21_s9 }
   0x8   :  { %s976_s1 = smov 128   ;;  %s977_s10 = smov 8  }
   0x9   :  { %66 = dma.hbm_to_vmem [thread:$0]  %s59_s28, 16384, %s61_s30, [#allocation12], %s976_s1, %s976_s1, %s977_s10  }
   0xa   :  { %s978_s11 = smov [#allocation5]   ;;  %s45_s15 = sshll.u32 %s1581_s2, 4  ;;  %s46_s15 = int_to_ptr.hbm [resolvable:$true] %s45_s15 }
   0xb   :  { %s23_s12 = sshll.u32 %s978_s11, 4  ;;  %s979_s3 = smov 16   ;;  %s24_s12 = int_to_ptr.vmem [resolvable:$true] %s23_s12 }
   0xc   :  { %s980_s16 = smov 1   ;;  %s981_s17 = smov [#allocation10]  }
   0xd   :  { %29 = dma.hbm_to_vmem [thread:$0]  %s22_s9, 128, %s24_s12, [#allocation6], %s979_s3, %s979_s3, %s980_s16  }
   0xe   :  { %s47_s18 = sshll.u32 %s981_s17, 4  ;;  %s72_s20 = sshll.u32 %s1583_s4, 4  ;;  %s48_s18 = int_to_ptr.vmem [resolvable:$true] %s47_s18  ;;  %s73_s20 = int_to_ptr.hbm [resolvable:$true] %s72_s20 }
   0xf   :  { %53 = dma.hbm_to_vmem [thread:$0]  %s46_s15, 2048, %s48_s18, [#allocation9], %s976_s1, %s976_s1, %s977_s10  }
  0x10   :  { %s982_s21 = smov [#allocation13]  }
  0x11   :  { %s74_s22 = sshll.u32 %s982_s21, 4  ;;  %s75_s22 = int_to_ptr.vmem [resolvable:$true] %s74_s22 }
  0x12   :  { %77 = dma.hbm_to_vmem [thread:$0]  %s73_s20, 128, %s75_s22, [#allocation12]  }
  0x13   :  { %964 = dma.done.wait [#allocation6], 128  }
  0x14   :  { %965 = vsyncadd [#allocation6], 4294967168 }
  0x15   :  { %966 = dma.done.wait [#allocation9], 2176  }
  0x16   :  { %967 = vsyncadd [#allocation9], 4294965120 }
  0x17   :  { %968 = dma.done.wait [#allocation12], 16512  }
  0x18   :  { %969 = vsyncadd [#allocation12], 4294950784  ;;  %v1038_v0 = vld [vmem:[#allocation11 + $0x78] sm:$0xff]  ;;  %v1050_v4 = vld [vmem:[#allocation11 + $0x70] sm:$0xff]  ;;  %vm102_vm0 = vcmask 7168   ;;  %vm413_vm1 = vcmask 1041409  }
  0x19   :  { %v1040_v1 = vld [vmem:[#allocation11 + $0x178] sm:$0xff]  ;;  %242 = vmatpush.xpose.msra.mxu0 %v1038_v0  ;;  %v1052_v5 = vld [vmem:[#allocation11 + $0x170] sm:$0xff]  ;;  %v1062_v8 = vld [vmem:[#allocation11 + $0x68] sm:$0xff]  ;;  %vm416_vm2 = vcmask 1042434   ;;  %vm419_vm3 = vcmask 1043459   ;;  %vm422_vm4 = vcmask 1044484  }
  0x1a   :  { %v1042_v2 = vld [vmem:[#allocation11 + $0xf8] sm:$0xff]  ;;  %282 = vmatpush.xpose.msra.mxu2 %v1040_v1  ;;  %v1054_v6 = vld [vmem:[#allocation11 + $0xf0] sm:$0xff]  ;;  %v1064_v9 = vld [vmem:[#allocation11 + $0x168] sm:$0xff]  ;;  %vm425_vm5 = vcmask 1045509   ;;  %vm428_vm6 = vcmask 1046534   ;;  %vm431_vm7 = vcmask 1047559  }
  0x1b   :  { %1654 = vst [vmem:[#allocation22_spill] sm:$0xff] %v1042_v2  ;;  %v1046_v3 = vld [vmem:[#allocation11 + $0x1f8] sm:$0xff]  ;;  %262 = vmatpush.xpose.msra.mxu1 %v1042_v2  ;;  %v1056_v7 = vld [vmem:[#allocation11 + $0x1f0] sm:$0xff]  ;;  %v1066_v10 = vld [vmem:[#allocation11 + $0xe8] sm:$0xff]  ;;  %s986_s2 = smov [#allocation15]   ;;  %s751_s25 = sshll.u32 %s1585_s6, 4  ;;  %s752_s25 = int_to_ptr.hbm [resolvable:$true] %s751_s25 }
  0x1c   :  { %302 = vmatpush.xpose.msra.mxu3 %v1046_v3  ;;  %1655 = vst [vmem:[#allocation23_spill] sm:$0xff] %v1054_v6  ;;  %v1068_v11 = vld [vmem:[#allocation11 + $0x1e8] sm:$0xff]  ;;  %v1074_v12 = vld [vmem:[#allocation11 + $0x60] sm:$0xff]  ;;  %v1086_v16 = vld [vmem:[#allocation11 + $0x58] sm:$0xff]  ;;  %s749_s4 = sshll.u32 %s986_s2, 4  ;;  %s987_s26 = smov [#allocation14]   ;;  %s750_s4 = int_to_ptr.vmem [resolvable:$true] %s749_s4 }
  0x1d   :  { %243 = vmatpush.xpose.msra.mxu0 %v1050_v4  ;;  %1656 = vst [vmem:[#allocation24_spill] sm:$0xff] %v1066_v10  ;;  %v1076_v13 = vld [vmem:[#allocation11 + $0x160] sm:$0xff]  ;;  %v1088_v17 = vld [vmem:[#allocation11 + $0x158] sm:$0xff]  ;;  %v1098_v20 = vld [vmem:[#allocation11 + $0x50] sm:$0xff]  ;;  %s738_s27 = sshll.u32 %s987_s26, 4  ;;  %s740_s30 = sshll.u32 %s1584_s5, 4  ;;  %s739_s27 = int_to_ptr.vmem [resolvable:$true] %s738_s27  ;;  %s741_s30 = int_to_ptr.hbm [resolvable:$true] %s740_s30 }
  0x1e   :  { %283 = vmatpush.xpose.msra.mxu2 %v1052_v5  ;;  %v1078_v14 = vld [vmem:[#allocation11 + $0xe0] sm:$0xff]  ;;  %v1090_v18 = vld [vmem:[#allocation11 + $0xd8] sm:$0xff]  ;;  %v1100_v21 = vld [vmem:[#allocation11 + $0x150] sm:$0xff] }
  0x1f   :  { %263 = vmatpush.xpose.msra.mxu1 %v1054_v6  ;;  %1657 = vst [vmem:[#allocation25_spill] sm:$0xff] %v1078_v14  ;;  %v1080_v15 = vld [vmem:[#allocation11 + $0x1e0] sm:$0xff]  ;;  %v1092_v19 = vld [vmem:[#allocation11 + $0x1d8] sm:$0xff]  ;;  %v1102_v22 = vld [vmem:[#allocation11 + $0xd0] sm:$0xff] }
  0x20   :  { %303 = vmatpush.xpose.msra.mxu3 %v1056_v7  ;;  %1658 = vst [vmem:[#allocation26_spill] sm:$0xff] %v1090_v18  ;;  %v1104_v23 = vld [vmem:[#allocation11 + $0x1d0] sm:$0xff]  ;;  %v1110_v24 = vld [vmem:[#allocation11 + $0x48] sm:$0xff]  ;;  %v1122_v28 = vld [vmem:[#allocation11 + $0x40] sm:$0xff] }
  0x21   :  { %244 = vmatpush.xpose.msra.mxu0 %v1062_v8  ;;  %1659 = vst [vmem:[#allocation27_spill] sm:$0xff] %v1102_v22  ;;  %v1112_v25 = vld [vmem:[#allocation11 + $0x148] sm:$0xff]  ;;  %v1124_v29 = vld [vmem:[#allocation11 + $0x140] sm:$0xff]  ;;  %v1134_v32 = vld [vmem:[#allocation11 + $0x38] sm:$0xff] }
  0x22   :  { %284 = vmatpush.xpose.msra.mxu2 %v1064_v9  ;;  %v1114_v26 = vld [vmem:[#allocation11 + $0xc8] sm:$0xff]  ;;  %v1126_v30 = vld [vmem:[#allocation11 + $0xc0] sm:$0xff]  ;;  %v1136_v33 = vld [vmem:[#allocation11 + $0x138] sm:$0xff] }
  0x23   :  { %264 = vmatpush.xpose.msra.mxu1 %v1066_v10  ;;  %1660 = vst [vmem:[#allocation28_spill] sm:$0xff] %v1114_v26  ;;  %v1116_v27 = vld [vmem:[#allocation11 + $0x1c8] sm:$0xff]  ;;  %v1128_v31 = vld [vmem:[#allocation11 + $0x1c0] sm:$0xff]  ;;  %v1138_v34 = vld [vmem:[#allocation11 + $0xb8] sm:$0xff] }
  0x24   :  { %304 = vmatpush.xpose.msra.mxu3 %v1068_v11  ;;  %1661 = vst [vmem:[#allocation29_spill] sm:$0xff] %v1126_v30  ;;  %v1140_v35 = vld [vmem:[#allocation11 + $0x1b8] sm:$0xff]  ;;  %v1146_v36 = vld [vmem:[#allocation11 + $0x30] sm:$0xff]  ;;  %v1158_v40 = vld [vmem:[#allocation11 + $0x28] sm:$0xff] }
  0x25   :  { %245 = vmatpush.xpose.msra.mxu0 %v1074_v12  ;;  %1662 = vst [vmem:[#allocation30_spill] sm:$0xff] %v1138_v34  ;;  %v1148_v37 = vld [vmem:[#allocation11 + $0x130] sm:$0xff]  ;;  %v1160_v41 = vld [vmem:[#allocation11 + $0x128] sm:$0xff]  ;;  %v1170_v44 = vld [vmem:[#allocation11 + $0x20] sm:$0xff] }
  0x26   :  { %285 = vmatpush.xpose.msra.mxu2 %v1076_v13  ;;  %v1150_v38 = vld [vmem:[#allocation11 + $0xb0] sm:$0xff]  ;;  %v1162_v42 = vld [vmem:[#allocation11 + $0xa8] sm:$0xff]  ;;  %v1172_v45 = vld [vmem:[#allocation11 + $0x120] sm:$0xff] }
  0x27   :  { %265 = vmatpush.xpose.msra.mxu1 %v1078_v14  ;;  %1663 = vst [vmem:[#allocation31_spill] sm:$0xff] %v1150_v38  ;;  %v1152_v39 = vld [vmem:[#allocation11 + $0x1b0] sm:$0xff]  ;;  %v1164_v43 = vld [vmem:[#allocation11 + $0x1a8] sm:$0xff]  ;;  %v1174_v46 = vld [vmem:[#allocation11 + $0xa0] sm:$0xff] }
  0x28   :  { %305 = vmatpush.xpose.msra.mxu3 %v1080_v15  ;;  %1664 = vst [vmem:[#allocation32_spill] sm:$0xff] %v1162_v42  ;;  %v1176_v47 = vld [vmem:[#allocation11 + $0x1a0] sm:$0xff]  ;;  %v1182_v48 = vld [vmem:[#allocation11 + $0x18] sm:$0xff]  ;;  %v1194_v52 = vld [vmem:[#allocation11 + $0x10] sm:$0xff] }
  0x29   :  { %246 = vmatpush.xpose.msra.mxu0 %v1086_v16  ;;  %1665 = vst [vmem:[#allocation33_spill] sm:$0xff] %v1174_v46  ;;  %v1184_v49 = vld [vmem:[#allocation11 + $0x118] sm:$0xff]  ;;  %v1196_v53 = vld [vmem:[#allocation11 + $0x110] sm:$0xff]  ;;  %v1206_v56 = vld [vmem:[#allocation11 + $0x8] sm:$0xff] }
  0x2a   :  { %286 = vmatpush.xpose.msra.mxu2 %v1088_v17  ;;  %v1186_v50 = vld [vmem:[#allocation11 + $0x98] sm:$0xff]  ;;  %v1198_v54 = vld [vmem:[#allocation11 + $0x90] sm:$0xff]  ;;  %v1208_v57 = vld [vmem:[#allocation11 + $0x108] sm:$0xff] }
  0x2b   :  { %266 = vmatpush.xpose.msra.mxu1 %v1090_v18  ;;  %1666 = vst [vmem:[#allocation34_spill] sm:$0xff] %v1186_v50  ;;  %v1188_v51 = vld [vmem:[#allocation11 + $0x198] sm:$0xff]  ;;  %v1200_v55 = vld [vmem:[#allocation11 + $0x190] sm:$0xff]  ;;  %v1210_v58 = vld [vmem:[#allocation11 + $0x88] sm:$0xff] }
  0x2c   :  { %306 = vmatpush.xpose.msra.mxu3 %v1092_v19  ;;  %1667 = vst [vmem:[#allocation35_spill] sm:$0xff] %v1198_v54  ;;  %v1212_v59 = vld [vmem:[#allocation11 + $0x188] sm:$0xff]  ;;  %v1218_v60 = vld [vmem:[#allocation11] sm:$0xff]  ;;  %v1284_v10 = vld [vmem:[#allocation11 + $0x3d8] sm:$0xff] }
  0x2d   :  { %247 = vmatpush.xpose.msra.mxu0 %v1098_v20  ;;  %1668 = vst [vmem:[#allocation36_spill] sm:$0xff] %v1200_v55  ;;  %v1220_v61 = vld [vmem:[#allocation11 + $0x100] sm:$0xff]  ;;  %v1300_v6 = vld [vmem:[#allocation11 + $0x248] sm:$0xff] }
  0x2e   :  { %287 = vmatpush.xpose.msra.mxu2 %v1100_v21  ;;  %1669 = vst [vmem:[#allocation37_spill] sm:$0xff] %v1208_v57  ;;  %v1222_v62 = vld [vmem:[#allocation11 + $0x80] sm:$0xff] }
  0x2f   :  { %267 = vmatpush.xpose.msra.mxu1 %v1102_v22  ;;  %1670 = vst [vmem:[#allocation38_spill] sm:$0xff] %v1210_v58  ;;  %v1224_v63 = vld [vmem:[#allocation11 + $0x180] sm:$0xff]  ;;  %v1260_v22 = vld [vmem:[#allocation11 + $0x3e8] sm:$0xff] }
  0x30   :  { %307 = vmatpush.xpose.msra.mxu3 %v1104_v23  ;;  %1671 = vst [vmem:[#allocation39_spill] sm:$0xff] %v1212_v59  ;;  %v1266_v18 = vld [vmem:[#allocation11 + $0x260] sm:$0xff] }
  0x31   :  { %248 = vmatpush.xpose.msra.mxu0 %v1110_v24  ;;  %1672 = vst [vmem:[#allocation40_spill] sm:$0xff] %v1218_v60  ;;  %v1270_v14 = vld [vmem:[#allocation11 + $0x2e0] sm:$0xff] }
  0x32   :  { %288 = vmatpush.xpose.msra.mxu2 %v1112_v25  ;;  %1673 = vst [vmem:[#allocation41_spill] sm:$0xff] %v1220_v61  ;;  %v1368_v2 = vld [vmem:[#allocation11 + $0x3a0] sm:$0xff] }
  0x33   :  { %268 = vmatpush.xpose.msra.mxu1 %v1114_v26  ;;  %1674 = vst [vmem:[#allocation42_spill] sm:$0xff] %v1222_v62  ;;  %v1258_v26 = vld [vmem:[#allocation11 + $0x2e8] sm:$0xff] }
  0x34   :  { %308 = vmatpush.xpose.msra.mxu3 %v1116_v27  ;;  %1675 = vst [vmem:[#allocation43_spill] sm:$0xff] %v1224_v63 }
  0x35   :  { %249 = vmatpush.xpose.msra.mxu0 %v1122_v28  ;;  %1683 = vst [vmem:[#allocation51_spill] sm:$0xff] %v1258_v26 }
  0x36   :  { %289 = vmatpush.xpose.msra.mxu2 %v1124_v29  ;;  %1684 = vst [vmem:[#allocation52_spill] sm:$0xff] %v1260_v22 }
  0x37   :  { %269 = vmatpush.xpose.msra.mxu1 %v1126_v30  ;;  %v1248_v30 = vld [vmem:[#allocation11 + $0x3f0] sm:$0xff]  ;;  %1686 = vst [vmem:[#allocation54_spill] sm:$0xff] %v1270_v14 }
  0x38   :  { %309 = vmatpush.xpose.msra.mxu3 %v1128_v31  ;;  %1681 = vst [vmem:[#allocation49_spill] sm:$0xff] %v1248_v30 }
  0x39   :  { %250 = vmatpush.xpose.msra.mxu0 %v1134_v32  ;;  %1690 = vst [vmem:[#allocation58_spill] sm:$0xff] %v1284_v10 }
  0x3a   :  { %290 = vmatpush.xpose.msra.mxu2 %v1136_v33  ;;  %1711 = vst [vmem:[#allocation79_spill] sm:$0xff] %v1368_v2 }
  0x3b   :  { %270 = vmatpush.xpose.msra.mxu1 %v1138_v34  ;;  %v1246_v34 = vld [vmem:[#allocation11 + $0x2f0] sm:$0xff] }
  0x3c   :  { %310 = vmatpush.xpose.msra.mxu3 %v1140_v35  ;;  %1680 = vst [vmem:[#allocation48_spill] sm:$0xff] %v1246_v34 }
  0x3d   :  { %251 = vmatpush.xpose.msra.mxu0 %v1146_v36 }
  0x3e   :  { %291 = vmatpush.xpose.msra.mxu2 %v1148_v37 }
  0x3f   :  { %271 = vmatpush.xpose.msra.mxu1 %v1150_v38  ;;  %v1244_v38 = vld [vmem:[#allocation11 + $0x370] sm:$0xff] }
  0x40   :  { %311 = vmatpush.xpose.msra.mxu3 %v1152_v39  ;;  %1679 = vst [vmem:[#allocation47_spill] sm:$0xff] %v1244_v38 }
  0x41   :  { %252 = vmatpush.xpose.msra.mxu0 %v1158_v40 }
  0x42   :  { %292 = vmatpush.xpose.msra.mxu2 %v1160_v41 }
  0x43   :  { %272 = vmatpush.xpose.msra.mxu1 %v1162_v42  ;;  %v1242_v42 = vld [vmem:[#allocation11 + $0x270] sm:$0xff] }
  0x44   :  { %312 = vmatpush.xpose.msra.mxu3 %v1164_v43 }
  0x45   :  { %253 = vmatpush.xpose.msra.mxu0 %v1170_v44 }
  0x46   :  { %293 = vmatpush.xpose.msra.mxu2 %v1172_v45 }
  0x47   :  { %273 = vmatpush.xpose.msra.mxu1 %v1174_v46  ;;  %v1232_v46 = vld [vmem:[#allocation11 + $0x2f8] sm:$0xff] }
  0x48   :  { %313 = vmatpush.xpose.msra.mxu3 %v1176_v47  ;;  %1677 = vst [vmem:[#allocation45_spill] sm:$0xff] %v1232_v46 }
  0x49   :  { %254 = vmatpush.xpose.msra.mxu0 %v1182_v48 }
  0x4a   :  { %294 = vmatpush.xpose.msra.mxu2 %v1184_v49 }
  0x4b   :  { %274 = vmatpush.xpose.msra.mxu1 %v1186_v50  ;;  %v1228_v50 = vld [vmem:[#allocation11 + $0x378] sm:$0xff] }
  0x4c   :  { %314 = vmatpush.xpose.msra.mxu3 %v1188_v51  ;;  %1676 = vst [vmem:[#allocation44_spill] sm:$0xff] %v1228_v50 }
  0x4d   :  { %255 = vmatpush.xpose.msra.mxu0 %v1194_v52 }
  0x4e   :  { %295 = vmatpush.xpose.msra.mxu2 %v1196_v53 }
  0x4f   :  { %275 = vmatpush.xpose.msra.mxu1 %v1198_v54  ;;  %v1226_v54 = vld [vmem:[#allocation11 + $0x278] sm:$0xff] }
  0x50   :  { %315 = vmatpush.xpose.msra.mxu3 %v1200_v55  ;;  %v238_v55 = vld [vmem:[#allocation5 + $0x4] sm:$0x1] }
  0x51   :  { %256 = vmatpush.xpose.msra.mxu0 %v1206_v56 }
  0x52   :  { %296 = vmatpush.xpose.msra.mxu2 %v1208_v57  ;;  %v1404_v57 = vld [vmem:[#allocation11 + $0x388] sm:$0xff] }
  0x53   :  { %276 = vmatpush.xpose.msra.mxu1 %v1210_v58  ;;  %v1234_v58 = vld [vmem:[#allocation11 + $0x3f8] sm:$0xff]  ;;  %1721 = vst [vmem:[#allocation89_spill] sm:$0xff] %v1404_v57 }
  0x54   :  { %316 = vmatpush.xpose.msra.mxu3 %v1212_v59  ;;  %1678 = vst [vmem:[#allocation46_spill] sm:$0xff] %v1234_v58  ;;  %v1380_v59 = vld [vmem:[#allocation11 + $0x398] sm:$0xff] }
  0x55   :  { %257 = vmatpush.xpose.msra.mxu0 %v1218_v60  ;;  %1714 = vst [vmem:[#allocation82_spill] sm:$0xff] %v1380_v59  ;;  %v1392_v60 = vld [vmem:[#allocation11 + $0x390] sm:$0xff] }
  0x56   :  { %297 = vmatpush.xpose.msra.mxu2 %v1220_v61  ;;  %v1308_v61 = vld [vmem:[#allocation11 + $0x3c8] sm:$0xff]  ;;  %1718 = vst [vmem:[#allocation86_spill] sm:$0xff] %v1392_v60 }
  0x57   :  { %277 = vmatpush.xpose.msra.mxu1 %v1222_v62  ;;  %v1254_v62 = vld [vmem:[#allocation11 + $0x268] sm:$0xff]  ;;  %1696 = vst [vmem:[#allocation64_spill] sm:$0xff] %v1308_v61 }
  0x58   :  { %317 = vmatpush.xpose.msra.mxu3 %v1224_v63  ;;  %v1306_v63 = vld [vmem:[#allocation11 + $0x2c8] sm:$0xff] }
  0x59   :  { %322 = vmatpush.xpose.msrb.mxu0 %v1226_v54  ;;  %1695 = vst [vmem:[#allocation63_spill] sm:$0xff] %v1306_v63 }
  0x5a   :  { %362 = vmatpush.xpose.msrb.mxu2 %v1228_v50  ;;  %v235_v50 = vld [vmem:[#allocation5 + $0x1] sm:$0x1] }
  0x5b   :  { %342 = vmatpush.xpose.msrb.mxu1 %v1232_v46  ;;  %v1256_v46 = vld [vmem:[#allocation11 + $0x368] sm:$0xff] }
  0x5c   :  { %382 = vmatpush.xpose.msrb.mxu3 %v1234_v58  ;;  %1682 = vst [vmem:[#allocation50_spill] sm:$0xff] %v1256_v46  ;;  %v1296_v58 = vld [vmem:[#allocation11 + $0x3d0] sm:$0xff]  ;;  %278 = vmatmul.f32.vlgmr.msra.gmra.mxu1 %v235_v50  ;;  %v1330_v50 = vld [vmem:[#allocation11 + $0x2b8] sm:$0xff] }
  0x5d   :  { %323 = vmatpush.xpose.msrb.mxu0 %v1242_v42  ;;  %1693 = vst [vmem:[#allocation61_spill] sm:$0xff] %v1296_v58 }
  0x5e   :  { %363 = vmatpush.xpose.msrb.mxu2 %v1244_v38  ;;  %v1294_v38 = vld [vmem:[#allocation11 + $0x2d0] sm:$0xff]  ;;  %1701 = vst [vmem:[#allocation69_spill] sm:$0xff] %v1330_v50 }
  0x5f   :  { %343 = vmatpush.xpose.msrb.mxu1 %v1246_v34  ;;  %v1268_v34 = vld [vmem:[#allocation11 + $0x360] sm:$0xff]  ;;  %1692 = vst [vmem:[#allocation60_spill] sm:$0xff] %v1294_v38 }
  0x60   :  { %383 = vmatpush.xpose.msrb.mxu3 %v1248_v30  ;;  %1685 = vst [vmem:[#allocation53_spill] sm:$0xff] %v1268_v34  ;;  %v1272_v30 = vld [vmem:[#allocation11 + $0x3e0] sm:$0xff] }
  0x61   :  { %324 = vmatpush.xpose.msrb.mxu0 %v1254_v62  ;;  %1687 = vst [vmem:[#allocation55_spill] sm:$0xff] %v1272_v30 }
  0x62   :  { %364 = vmatpush.xpose.msrb.mxu2 %v1256_v46  ;;  %v1278_v46 = vld [vmem:[#allocation11 + $0x258] sm:$0xff] }
  0x63   :  { %344 = vmatpush.xpose.msrb.mxu1 %v1258_v26  ;;  %v1280_v26 = vld [vmem:[#allocation11 + $0x358] sm:$0xff] }
  0x64   :  { %384 = vmatpush.xpose.msrb.mxu3 %v1260_v22  ;;  %1688 = vst [vmem:[#allocation56_spill] sm:$0xff] %v1280_v26  ;;  %v1282_v22 = vld [vmem:[#allocation11 + $0x2d8] sm:$0xff] }
  0x65   :  { %325 = vmatpush.xpose.msrb.mxu0 %v1266_v18  ;;  %1689 = vst [vmem:[#allocation57_spill] sm:$0xff] %v1282_v22 }
  0x66   :  { %365 = vmatpush.xpose.msrb.mxu2 %v1268_v34  ;;  %v1290_v34 = vld [vmem:[#allocation11 + $0x250] sm:$0xff] }
  0x67   :  { %345 = vmatpush.xpose.msrb.mxu1 %v1270_v14  ;;  %v1292_v14 = vld [vmem:[#allocation11 + $0x350] sm:$0xff] }
  0x68   :  { %385 = vmatpush.xpose.msrb.mxu3 %v1272_v30  ;;  %1691 = vst [vmem:[#allocation59_spill] sm:$0xff] %v1292_v14  ;;  %v236_v30 = vld [vmem:[#allocation5 + $0x2] sm:$0x1] }
  0x69   :  { %326 = vmatpush.xpose.msrb.mxu0 %v1278_v46  ;;  %298 = vmatmul.f32.vlgmr.msra.gmra.mxu2 %v236_v30  ;;  %v1314_v30 = vld [vmem:[#allocation11 + $0x240] sm:$0xff] }
  0x6a   :  { %366 = vmatpush.xpose.msrb.mxu2 %v1280_v26  ;;  %v237_v26 = vld [vmem:[#allocation5 + $0x3] sm:$0x1] }
  0x6b   :  { %346 = vmatpush.xpose.msrb.mxu1 %v1282_v22  ;;  %v1304_v22 = vld [vmem:[#allocation11 + $0x348] sm:$0xff]  ;;  %318 = vmatmul.f32.vlgmr.msra.gmra.mxu3 %v237_v26  ;;  %v1328_v26 = vld [vmem:[#allocation11 + $0x338] sm:$0xff] }
  0x6c   :  { %386 = vmatpush.xpose.msrb.mxu3 %v1284_v10  ;;  %1694 = vst [vmem:[#allocation62_spill] sm:$0xff] %v1304_v22  ;;  %v234_v10 = vld [vmem:[#allocation5] sm:$0x1] }
  0x6d   :  { %327 = vmatpush.xpose.msrb.mxu0 %v1290_v34  ;;  %1700 = vst [vmem:[#allocation68_spill] sm:$0xff] %v1328_v26 }
  0x6e   :  { %367 = vmatpush.xpose.msrb.mxu2 %v1292_v14  ;;  %258 = vmatmul.f32.vlgmr.msra.gmra.mxu0 %v234_v10  ;;  %v1320_v14 = vld [vmem:[#allocation11 + $0x3c0] sm:$0xff]  ;;  %v1326_v10 = vld [vmem:[#allocation11 + $0x238] sm:$0xff] }
  0x6f   :  { %347 = vmatpush.xpose.msrb.mxu1 %v1294_v38  ;;  %v1316_v38 = vld [vmem:[#allocation11 + $0x340] sm:$0xff]  ;;  %1699 = vst [vmem:[#allocation67_spill] sm:$0xff] %v1320_v14 }
  0x70   :  { %387 = vmatpush.xpose.msrb.mxu3 %v1296_v58  ;;  %1697 = vst [vmem:[#allocation65_spill] sm:$0xff] %v1316_v38  ;;  %v1318_v58 = vld [vmem:[#allocation11 + $0x2c0] sm:$0xff] }
  0x71   :  { %328 = vmatpush.xpose.msrb.mxu0 %v1300_v6  ;;  %1698 = vst [vmem:[#allocation66_spill] sm:$0xff] %v1318_v58 }
  0x72   :  { %368 = vmatpush.xpose.msrb.mxu2 %v1304_v22  ;;  %v1356_v22 = vld [vmem:[#allocation11 + $0x3a8] sm:$0xff] }
  0x73   :  { %348 = vmatpush.xpose.msrb.mxu1 %v1306_v63  ;;  %v1332_v63 = vld [vmem:[#allocation11 + $0x3b8] sm:$0xff]  ;;  %1708 = vst [vmem:[#allocation76_spill] sm:$0xff] %v1356_v22 }
  0x74   :  { %388 = vmatpush.xpose.msrb.mxu3 %v1308_v61  ;;  %1702 = vst [vmem:[#allocation70_spill] sm:$0xff] %v1332_v63  ;;  %v1344_v61 = vld [vmem:[#allocation11 + $0x3b0] sm:$0xff] }
  0x75   :  { %329 = vmatpush.xpose.msrb.mxu0 %v1314_v30  ;;  %1705 = vst [vmem:[#allocation73_spill] sm:$0xff] %v1344_v61 }
  0x76   :  { %369 = vmatpush.xpose.msrb.mxu2 %v1316_v38  ;;  %v1338_v38 = vld [vmem:[#allocation11 + $0x230] sm:$0xff] }
  0x77   :  { %349 = vmatpush.xpose.msrb.mxu1 %v1318_v58  ;;  %v1340_v58 = vld [vmem:[#allocation11 + $0x330] sm:$0xff] }
  0x78   :  { %389 = vmatpush.xpose.msrb.mxu3 %v1320_v14  ;;  %1703 = vst [vmem:[#allocation71_spill] sm:$0xff] %v1340_v58  ;;  %v1342_v14 = vld [vmem:[#allocation11 + $0x2b0] sm:$0xff] }
  0x79   :  { %330 = vmatpush.xpose.msrb.mxu0 %v1326_v10  ;;  %1704 = vst [vmem:[#allocation72_spill] sm:$0xff] %v1342_v14 }
  0x7a   :  { %370 = vmatpush.xpose.msrb.mxu2 %v1328_v26  ;;  %v1350_v26 = vld [vmem:[#allocation11 + $0x228] sm:$0xff] }
  0x7b   :  { %350 = vmatpush.xpose.msrb.mxu1 %v1330_v50  ;;  %v1352_v50 = vld [vmem:[#allocation11 + $0x328] sm:$0xff] }
  0x7c   :  { %390 = vmatpush.xpose.msrb.mxu3 %v1332_v63  ;;  %1706 = vst [vmem:[#allocation74_spill] sm:$0xff] %v1352_v50  ;;  %v1354_v63 = vld [vmem:[#allocation11 + $0x2a8] sm:$0xff] }
  0x7d   :  { %331 = vmatpush.xpose.msrb.mxu0 %v1338_v38  ;;  %1707 = vst [vmem:[#allocation75_spill] sm:$0xff] %v1354_v63 }
  0x7e   :  { %371 = vmatpush.xpose.msrb.mxu2 %v1340_v58  ;;  %v1362_v58 = vld [vmem:[#allocation11 + $0x220] sm:$0xff] }
  0x7f   :  { %351 = vmatpush.xpose.msrb.mxu1 %v1342_v14  ;;  %v1364_v14 = vld [vmem:[#allocation11 + $0x320] sm:$0xff] }
  0x80   :  { %391 = vmatpush.xpose.msrb.mxu3 %v1344_v61  ;;  %1709 = vst [vmem:[#allocation77_spill] sm:$0xff] %v1364_v14  ;;  %v1366_v61 = vld [vmem:[#allocation11 + $0x2a0] sm:$0xff] }
  0x81   :  { %332 = vmatpush.xpose.msrb.mxu0 %v1350_v26  ;;  %1710 = vst [vmem:[#allocation78_spill] sm:$0xff] %v1366_v61 }
  0x82   :  { %372 = vmatpush.xpose.msrb.mxu2 %v1352_v50  ;;  %v1374_v50 = vld [vmem:[#allocation11 + $0x218] sm:$0xff] }
  0x83   :  { %352 = vmatpush.xpose.msrb.mxu1 %v1354_v63  ;;  %v1376_v63 = vld [vmem:[#allocation11 + $0x318] sm:$0xff] }
  0x84   :  { %392 = vmatpush.xpose.msrb.mxu3 %v1356_v22  ;;  %1712 = vst [vmem:[#allocation80_spill] sm:$0xff] %v1376_v63  ;;  %v1378_v22 = vld [vmem:[#allocation11 + $0x298] sm:$0xff] }
  0x85   :  { %333 = vmatpush.xpose.msrb.mxu0 %v1362_v58  ;;  %1713 = vst [vmem:[#allocation81_spill] sm:$0xff] %v1378_v22 }
  0x86   :  { %373 = vmatpush.xpose.msrb.mxu2 %v1364_v14  ;;  %v1386_v14 = vld [vmem:[#allocation11 + $0x210] sm:$0xff] }
  0x87   :  { %353 = vmatpush.xpose.msrb.mxu1 %v1366_v61  ;;  %1715 = vst [vmem:[#allocation83_spill] sm:$0xff] %v1386_v14  ;;  %v1388_v61 = vld [vmem:[#allocation11 + $0x310] sm:$0xff] }
  0x88   :  { %393 = vmatpush.xpose.msrb.mxu3 %v1368_v2  ;;  %1716 = vst [vmem:[#allocation84_spill] sm:$0xff] %v1388_v61  ;;  %v1390_v2 = vld [vmem:[#allocation11 + $0x290] sm:$0xff] }
  0x89   :  { %334 = vmatpush.xpose.msrb.mxu0 %v1374_v50  ;;  %1717 = vst [vmem:[#allocation85_spill] sm:$0xff] %v1390_v2 }
  0x8a   :  { %374 = vmatpush.xpose.msrb.mxu2 %v1376_v63  ;;  %v1398_v63 = vld [vmem:[#allocation11 + $0x208] sm:$0xff] }
  0x8b   :  { %354 = vmatpush.xpose.msrb.mxu1 %v1378_v22  ;;  %1719 = vst [vmem:[#allocation87_spill] sm:$0xff] %v1398_v63  ;;  %v1400_v22 = vld [vmem:[#allocation11 + $0x308] sm:$0xff] }
  0x8c   :  { %394 = vmatpush.xpose.msrb.mxu3 %v1380_v59  ;;  %v1402_v59 = vld [vmem:[#allocation11 + $0x288] sm:$0xff] }
  0x8d   :  { %335 = vmatpush.xpose.msrb.mxu0 %v1386_v14  ;;  %1720 = vst [vmem:[#allocation88_spill] sm:$0xff] %v1402_v59  ;;  %v1416_v14 = vld [vmem:[#allocation11 + $0x380] sm:$0xff] }
  0x8e   :  { %375 = vmatpush.xpose.msrb.mxu2 %v1388_v61  ;;  %v1410_v61 = vld [vmem:[#allocation11 + $0x200] sm:$0xff] }
  0x8f   :  { %355 = vmatpush.xpose.msrb.mxu1 %v1390_v2  ;;  %v1412_v2 = vld [vmem:[#allocation11 + $0x300] sm:$0xff] }
  0x90   :  { %395 = vmatpush.xpose.msrb.mxu3 %v1392_v60  ;;  %v1414_v60 = vld [vmem:[#allocation11 + $0x280] sm:$0xff] }
  0x91   :  { %336 = vmatpush.xpose.msrb.mxu0 %v1398_v63  ;;  %v240_v63 = vld [vmem:[#allocation5 + $0x6] sm:$0x1] }
  0x92   :  { %376 = vmatpush.xpose.msrb.mxu2 %v1400_v22 }
  0x93   :  { %356 = vmatpush.xpose.msrb.mxu1 %v1402_v59  ;;  %v239_v59 = vld [vmem:[#allocation5 + $0x5] sm:$0x1] }
  0x94   :  { %396 = vmatpush.xpose.msrb.mxu3 %v1404_v57  ;;  %v241_v57 = vld [vmem:[#allocation5 + $0x7] sm:$0x1] }
  0x95   :  { %337 = vmatpush.xpose.msrb.mxu0 %v1410_v61 }
  0x96   :  { %377 = vmatpush.xpose.msrb.mxu2 %v1412_v2 }
  0x97   :  { %357 = vmatpush.xpose.msrb.mxu1 %v1414_v60 }
  0x98   :  { %397 = vmatpush.xpose.msrb.mxu3 %v1416_v14  ;;  %338 = vmatmul.f32.vlgmr.msrb.gmra.mxu0 %v238_v55  ;;  %v1770_v55 = vld [vmem:[#allocation84_spill] sm:$0xff] }
  0x99   :  { %378 = vmatmul.f32.vlgmr.msrb.gmra.mxu2 %v240_v63  ;;  %552 = vmatpush.msra.mxu0 %v1226_v54  ;;  %v1769_v54 = vld [vmem:[#allocation82_spill] sm:$0xff] }
  0x9a   :  { %512 = vmatpush.msra.mxu2 %v1040_v1  ;;  %358 = vmatmul.f32.vlgmr.msrb.gmra.mxu1 %v239_v59  ;;  %v1723_v1 = vld [vmem:[#allocation37_spill] sm:$0xff] }
  0x9b   :  { %472 = vmatpush.msra.mxu1 %v1038_v0  ;;  %398 = vmatmul.f32.vlgmr.msrb.gmra.mxu3 %v241_v57  ;;  %v1722_v0 = vld [vmem:[#allocation36_spill] sm:$0xff]  ;;  %v1772_v57 = vld [vmem:[#allocation86_spill] sm:$0xff]  ;;  %v1774_v59 = vld [vmem:[#allocation89_spill] sm:$0xff] }
  0x9c   :  { %532 = vmatpush.msra.mxu3 %v1046_v3  ;;  %513 = vmatpush.msra.mxu2 %v1052_v5  ;;  %v1724_v3 = vld [vmem:[#allocation83_spill] sm:$0xff] }
  0x9d   :  { %473 = vmatpush.msra.mxu1 %v1050_v4  ;;  %553 = vmatpush.msra.mxu0 %v1242_v42  ;;  %v1725_v4 = vld [vmem:[#allocation40_spill] sm:$0xff]  ;;  %v1726_v5 = vld [vmem:[#allocation39_spill] sm:$0xff] }
  0x9e   :  { %533 = vmatpush.msra.mxu3 %v1056_v7  ;;  %514 = vmatpush.msra.mxu2 %v1064_v9  ;;  %v1728_v7 = vld [vmem:[#allocation41_spill] sm:$0xff]  ;;  %v1730_v9 = vld [vmem:[#allocation44_spill] sm:$0xff]  ;;  %v1758_v42 = vld [vmem:[#allocation71_spill] sm:$0xff] }
  0x9f   :  { %474 = vmatpush.msra.mxu1 %v1062_v8  ;;  %554 = vmatpush.msra.mxu0 %v1254_v62  ;;  %v1729_v8 = vld [vmem:[#allocation43_spill] sm:$0xff] }
  0xa0   :  { %534 = vmatpush.msra.mxu3 %v1068_v11  ;;  %515 = vmatpush.msra.mxu2 %v1076_v13  ;;  %v1731_v11 = vld [vmem:[#allocation23_spill] sm:$0xff] }
  0xa1   :  { %475 = vmatpush.msra.mxu1 %v1074_v12  ;;  %555 = vmatpush.msra.mxu0 %v1266_v18  ;;  %v1732_v12 = vld [vmem:[#allocation46_spill] sm:$0xff]  ;;  %v1733_v13 = vld [vmem:[#allocation47_spill] sm:$0xff] }
  0xa2   :  { %535 = vmatpush.msra.mxu3 %v1080_v15  ;;  %516 = vmatpush.msra.mxu2 %v1088_v17  ;;  %v1734_v15 = vld [vmem:[#allocation87_spill] sm:$0xff]  ;;  %v1736_v17 = vld [vmem:[#allocation49_spill] sm:$0xff]  ;;  %v1737_v18 = vld [vmem:[#allocation50_spill] sm:$0xff] }
  0xa3   :  { %476 = vmatpush.msra.mxu1 %v1086_v16  ;;  %556 = vmatpush.msra.mxu0 %v1278_v46  ;;  %v1735_v16 = vld [vmem:[#allocation24_spill] sm:$0xff]  ;;  %v1762_v46 = vld [vmem:[#allocation33_spill] sm:$0xff] }
  0xa4   :  { %536 = vmatpush.msra.mxu3 %v1092_v19  ;;  %517 = vmatpush.msra.mxu2 %v1100_v21  ;;  %v1738_v19 = vld [vmem:[#allocation25_spill] sm:$0xff] }
  0xa5   :  { %477 = vmatpush.msra.mxu1 %v1098_v20  ;;  %557 = vmatpush.msra.mxu0 %v1290_v34  ;;  %v1739_v20 = vld [vmem:[#allocation52_spill] sm:$0xff]  ;;  %v1740_v21 = vld [vmem:[#allocation53_spill] sm:$0xff] }
  0xa6   :  { %537 = vmatpush.msra.mxu3 %v1104_v23  ;;  %518 = vmatpush.msra.mxu2 %v1112_v25  ;;  %v1741_v23 = vld [vmem:[#allocation26_spill] sm:$0xff]  ;;  %v1743_v25 = vld [vmem:[#allocation56_spill] sm:$0xff]  ;;  %v1750_v34 = vld [vmem:[#allocation29_spill] sm:$0xff] }
  0xa7   :  { %478 = vmatpush.msra.mxu1 %v1110_v24  ;;  %558 = vmatpush.msra.mxu0 %v1300_v6  ;;  %v1727_v6 = vld [vmem:[#allocation22_spill] sm:$0xff]  ;;  %v1742_v24 = vld [vmem:[#allocation55_spill] sm:$0xff] }
  0xa8   :  { %538 = vmatpush.msra.mxu3 %v1116_v27  ;;  %519 = vmatpush.msra.mxu2 %v1124_v29  ;;  %v1744_v27 = vld [vmem:[#allocation27_spill] sm:$0xff] }
  0xa9   :  { %479 = vmatpush.msra.mxu1 %v1122_v28  ;;  %559 = vmatpush.msra.mxu0 %v1314_v30  ;;  %v1745_v28 = vld [vmem:[#allocation58_spill] sm:$0xff]  ;;  %v1746_v29 = vld [vmem:[#allocation59_spill] sm:$0xff] }
  0xaa   :  { %539 = vmatpush.msra.mxu3 %v1128_v31  ;;  %520 = vmatpush.msra.mxu2 %v1136_v33  ;;  %v1747_v31 = vld [vmem:[#allocation28_spill] sm:$0xff]  ;;  %v1749_v33 = vld [vmem:[#allocation62_spill] sm:$0xff] }
  0xab   :  { %480 = vmatpush.msra.mxu1 %v1134_v32  ;;  %560 = vmatpush.msra.mxu0 %v1326_v10  ;;  %v1748_v32 = vld [vmem:[#allocation61_spill] sm:$0xff] }
  0xac   :  { %540 = vmatpush.msra.mxu3 %v1140_v35  ;;  %521 = vmatpush.msra.mxu2 %v1148_v37  ;;  %v1751_v35 = vld [vmem:[#allocation64_spill] sm:$0xff]  ;;  %v1753_v37 = vld [vmem:[#allocation30_spill] sm:$0xff] }
  0xad   :  { %481 = vmatpush.msra.mxu1 %v1146_v36  ;;  %561 = vmatpush.msra.mxu0 %v1338_v38  ;;  %v1752_v36 = vld [vmem:[#allocation65_spill] sm:$0xff]  ;;  %v1754_v38 = vld [vmem:[#allocation67_spill] sm:$0xff] }
  0xae   :  { %541 = vmatpush.msra.mxu3 %v1152_v39  ;;  %522 = vmatpush.msra.mxu2 %v1160_v41  ;;  %v1755_v39 = vld [vmem:[#allocation68_spill] sm:$0xff]  ;;  %v1757_v41 = vld [vmem:[#allocation70_spill] sm:$0xff] }
  0xaf   :  { %482 = vmatpush.msra.mxu1 %v1158_v40  ;;  %562 = vmatpush.msra.mxu0 %v1350_v26  ;;  %v1756_v40 = vld [vmem:[#allocation31_spill] sm:$0xff] }
  0xb0   :  { %542 = vmatpush.msra.mxu3 %v1164_v43  ;;  %523 = vmatpush.msra.mxu2 %v1172_v45  ;;  %v1759_v43 = vld [vmem:[#allocation32_spill] sm:$0xff]  ;;  %v1761_v45 = vld [vmem:[#allocation74_spill] sm:$0xff] }
  0xb1   :  { %483 = vmatpush.msra.mxu1 %v1170_v44  ;;  %563 = vmatpush.msra.mxu0 %v1362_v58  ;;  %v1760_v44 = vld [vmem:[#allocation73_spill] sm:$0xff]  ;;  %v1773_v58 = vld [vmem:[#allocation42_spill] sm:$0xff] }
  0xb2   :  { %543 = vmatpush.msra.mxu3 %v1176_v47  ;;  %524 = vmatpush.msra.mxu2 %v1184_v49  ;;  %v1763_v47 = vld [vmem:[#allocation76_spill] sm:$0xff]  ;;  %v1765_v49 = vld [vmem:[#allocation34_spill] sm:$0xff] }
  0xb3   :  { %484 = vmatpush.msra.mxu1 %v1182_v48  ;;  %564 = vmatpush.msra.mxu0 %v1374_v50  ;;  %v1764_v48 = vld [vmem:[#allocation77_spill] sm:$0xff] }
  0xb4   :  { %544 = vmatpush.msra.mxu3 %v1188_v51  ;;  %525 = vmatpush.msra.mxu2 %v1196_v53  ;;  %v1766_v51 = vld [vmem:[#allocation79_spill] sm:$0xff] }
  0xb5   :  { %485 = vmatpush.msra.mxu1 %v1194_v52  ;;  %565 = vmatpush.msra.mxu0 %v1724_v3  ;;  %v1767_v52 = vld [vmem:[#allocation80_spill] sm:$0xff]  ;;  %v1768_v53 = vld [vmem:[#allocation35_spill] sm:$0xff] }
  0xb6   :  { %545 = vmatpush.msra.mxu3 %v1722_v0  ;;  %526 = vmatpush.msra.mxu2 %v1723_v1 }
  0xb7   :  { %486 = vmatpush.msra.mxu1 %v1206_v56  ;;  %566 = vmatpush.msra.mxu0 %v1734_v15  ;;  %v1771_v56 = vld [vmem:[#allocation38_spill] sm:$0xff] }
  0xb8   :  { %546 = vmatpush.msra.mxu3 %v1726_v5  ;;  %527 = vmatpush.msra.mxu2 %v1728_v7  ;;  %v402_v7 = vld [vmem:[#allocation13] sm:$0xff] }
  0xb9   :  { %487 = vmatpush.msra.mxu1 %v1725_v4  ;;  %567 = vmatpush.msra.mxu0 %v1410_v61  ;;  %v983_v61 = vmov -1e+30   ;;  %vm403_vm8 = vcmp.ne.s32.totalorder %v402_v7, 0  ;;  %v695_v7 = vld [vmem:[#allocation10 + $0x8] sm:$0xff] }
  0xba   :  { %547 = vmatpush.msra.mxu3 %v1729_v8  ;;  %592 = vmatpush.msrb.mxu2 %v1730_v9  ;;  %103 = vst.msk [vmem:[#allocation2] sm:$0xff] %vm102_vm0, %v983_v61 }
  0xbb   :  { %492 = vmatpush.msrb.mxu1 %v1727_v6 }
  0xbc   :  { %612 = vmatpush.msrb.mxu3 %v1732_v12  ;;  %593 = vmatpush.msrb.mxu2 %v1733_v13 }
  0xbd   :  { %493 = vmatpush.msrb.mxu1 %v1731_v11 }
  0xbe   :  { %613 = vmatpush.msrb.mxu3 %v1736_v17  ;;  %594 = vmatpush.msrb.mxu2 %v1737_v18  ;;  %v984_v18 = vmov 0  }
  0xbf   :  { %494 = vmatpush.msrb.mxu1 %v1735_v16  ;;  %783 = vset.pattern.permute.xlu0 %v984_v18 }
  0xc0   :  { %614 = vmatpush.msrb.mxu3 %v1739_v20  ;;  %595 = vmatpush.msrb.mxu2 %v1740_v21 }
  0xc1   :  { %495 = vmatpush.msrb.mxu1 %v1738_v19  ;;  %784 = vset.pattern.permute.xlu1 %v984_v18  ;;  %v985_v19 = vmov 0.0   ;;  %v435_v20 = vld [vmem:[#allocation2] sm:$0xff] }
  0xc2   :  { %615 = vmatpush.msrb.mxu3 %v1742_v24  ;;  %596 = vmatpush.msrb.mxu2 %v1743_v25  ;;  %104 = vst.msk [vmem:[#allocation3] sm:$0xff] %vm102_vm0, %v985_v19 }
  0xc3   :  { %496 = vmatpush.msrb.mxu1 %v1741_v23  ;;  %785 = vset.pattern.permute.xlu2 %v984_v18 }
  0xc4   :  { %616 = vmatpush.msrb.mxu3 %v1745_v28  ;;  %597 = vmatpush.msrb.mxu2 %v1746_v29 }
  0xc5   :  { %497 = vmatpush.msrb.mxu1 %v1744_v27 }
  0xc6   :  { %617 = vmatpush.msrb.mxu3 %v1748_v32  ;;  %598 = vmatpush.msrb.mxu2 %v1749_v33 }
  0xc7   :  { %498 = vmatpush.msrb.mxu1 %v1747_v31 }
  0xc8   :  { %618 = vmatpush.msrb.mxu3 %v1751_v35  ;;  %599 = vmatpush.msrb.mxu2 %v1752_v36  ;;  %v1776_v35 = vld [vmem:[#allocation48_spill] sm:$0xff]  ;;  %v1777_v36 = vld [vmem:[#allocation51_spill] sm:$0xff] }
  0xc9   :  { %499 = vmatpush.msrb.mxu1 %v1750_v34  ;;  %v1775_v34 = vld [vmem:[#allocation45_spill] sm:$0xff] }
  0xca   :  { %619 = vmatpush.msrb.mxu3 %v1754_v38  ;;  %600 = vmatpush.msrb.mxu2 %v1755_v39  ;;  %v1778_v38 = vld [vmem:[#allocation54_spill] sm:$0xff] }
  0xcb   :  { %500 = vmatpush.msrb.mxu1 %v1753_v37 }
  0xcc   :  { %620 = vmatpush.msrb.mxu3 %v1757_v41  ;;  %601 = vmatpush.msrb.mxu2 %v1758_v42  ;;  %v1779_v41 = vld [vmem:[#allocation57_spill] sm:$0xff]  ;;  %v1780_v42 = vld [vmem:[#allocation60_spill] sm:$0xff] }
  0xcd   :  { %501 = vmatpush.msrb.mxu1 %v1756_v40 }
  0xce   :  { %621 = vmatpush.msrb.mxu3 %v1760_v44  ;;  %602 = vmatpush.msrb.mxu2 %v1761_v45  ;;  %v1782_v45 = vld [vmem:[#allocation66_spill] sm:$0xff] }
  0xcf   :  { %502 = vmatpush.msrb.mxu1 %v1759_v43  ;;  %v1781_v43 = vld [vmem:[#allocation63_spill] sm:$0xff] }
  0xd0   :  { %622 = vmatpush.msrb.mxu3 %v1763_v47  ;;  %603 = vmatpush.msrb.mxu2 %v1764_v48  ;;  %v1784_v47 = vld [vmem:[#allocation72_spill] sm:$0xff]  ;;  %v1785_v48 = vld [vmem:[#allocation75_spill] sm:$0xff] }
  0xd1   :  { %503 = vmatpush.msrb.mxu1 %v1762_v46  ;;  %v1783_v46 = vld [vmem:[#allocation69_spill] sm:$0xff] }
  0xd2   :  { %623 = vmatpush.msrb.mxu3 %v1766_v51  ;;  %604 = vmatpush.msrb.mxu2 %v1767_v52  ;;  %v1787_v52 = vld [vmem:[#allocation81_spill] sm:$0xff] }
  0xd3   :  { %504 = vmatpush.msrb.mxu1 %v1765_v49  ;;  %v1786_v49 = vld [vmem:[#allocation78_spill] sm:$0xff] }
  0xd4   :  { %624 = vmatpush.msrb.mxu3 %v1769_v54  ;;  %605 = vmatpush.msrb.mxu2 %v1770_v55  ;;  %v1789_v54 = vld [vmem:[#allocation88_spill] sm:$0xff] }
  0xd5   :  { %505 = vmatpush.msrb.mxu1 %v1768_v53  ;;  %v1788_v53 = vld [vmem:[#allocation85_spill] sm:$0xff] }
  0xd6   :  { %625 = vmatpush.msrb.mxu3 %v1772_v57  ;;  %606 = vmatpush.msrb.mxu2 %v1400_v22 }
  0xd7   :  { %506 = vmatpush.msrb.mxu1 %v1771_v56  ;;  %v450_v56 = vld [vmem:[#allocation3] sm:$0xff] }
  0xd8   :  { %626 = vmatpush.msrb.mxu3 %v1774_v59  ;;  %607 = vmatpush.msrb.mxu2 %v1412_v2 }
  0xd9   :  { %507 = vmatpush.msrb.mxu1 %v1773_v58  ;;  %v279_v63 = vpop.f32.mrf.mxu1 }
  0xda   :  { %627 = vmatpush.msrb.mxu3 %v1416_v14  ;;  %v412_v30 = vrot.slane %v279_v63, 7  ;;  %v708_v63 = vld [vmem:[#allocation10 + $0x70] sm:$0xff] }
  0xeb   :  { %v259_v62 = vpop.f32.mrf.mxu0 }
  0xec   :  { %v299_v10 = vpop.f32.mrf.mxu2  ;;  %v414_v22 = vsel %vm413_vm1, %v412_v30, %v259_v62  ;;  %v709_v62 = vld [vmem:[#allocation10 + $0x78] sm:$0xff] }
  0xed   :  { %v415_v26 = vrot.slane %v299_v10, 6  ;;  %711 = vmatpush.xpose.msrb.mxu0 %v709_v62  ;;  %v707_v10 = vld [vmem:[#allocation10 + $0x68] sm:$0xff] }
  0xee   :  { %v319_v50 = vpop.f32.mrf.mxu3 }
  0xef   :  { %v418_v0 = vrot.slane %v319_v50, 5  ;;  %v417_v2 = vsel %vm416_vm2, %v415_v26, %v414_v22  ;;  %v706_v26 = vld [vmem:[#allocation10 + $0x60] sm:$0xff]  ;;  %v704_v22 = vld [vmem:[#allocation10 + $0x50] sm:$0xff] }
  0xf1   :  { %v420_v4 = vsel %vm419_vm3, %v418_v0, %v417_v2  ;;  %712 = vmatpush.xpose.msrb.mxu0 %v708_v63  ;;  %v703_v0 = vld [vmem:[#allocation10 + $0x48] sm:$0xff]  ;;  %v701_v2 = vld [vmem:[#allocation10 + $0x38] sm:$0xff] }
  0xf5   :  { %713 = vmatpush.xpose.msrb.mxu0 %v707_v10 }
  0xf9   :  { %714 = vmatpush.xpose.msrb.mxu0 %v706_v26 }
 0x115   :  { %v339_v1 = vpop.f32.mrf.mxu0 }
 0x116   :  { %v421_v14 = vrot.slane %v339_v1, 4  ;;  %v702_v1 = vld [vmem:[#allocation10 + $0x40] sm:$0xff] }
 0x117   :  { %v359_v3 = vpop.f32.mrf.mxu1 }
 0x118   :  { %v424_v5 = vrot.slane %v359_v3, 3  ;;  %v423_v6 = vsel %vm422_vm4, %v421_v14, %v420_v4  ;;  %v700_v14 = vld [vmem:[#allocation10 + $0x30] sm:$0xff]  ;;  %v699_v3 = vld [vmem:[#allocation10 + $0x28] sm:$0xff]  ;;  %v698_v4 = vld [vmem:[#allocation10 + $0x20] sm:$0xff] }
 0x11a   :  { %v426_v12 = vsel %vm425_vm5, %v424_v5, %v423_v6  ;;  %v697_v5 = vld [vmem:[#allocation10 + $0x18] sm:$0xff]  ;;  %v696_v6 = vld [vmem:[#allocation10 + $0x10] sm:$0xff] }
 0x11c   :  { %v379_v8 = vpop.f32.mrf.mxu2 }
 0x11d   :  { %v427_v9 = vrot.slane %v379_v8, 2 }
 0x11e   :  { %v399_v11 = vpop.f32.mrf.mxu3 }
 0x11f   :  { %v430_v13 = vrot.slane %v399_v11, 1  ;;  %v429_v15 = vsel %vm428_vm6, %v427_v9, %v426_v12  ;;  %v694_v9 = vld [vmem:[#allocation10] sm:$0xff] }
 0x121   :  { %v432_v16 = vsel %vm431_vm7, %v430_v13, %v429_v15 }
 0x122   :  { %v1542_v17 = vsel %vm403_vm8, -1e+30, %v432_v16 }
 0x123   :  { %436 = vmax.xlane.f32.xlu0 %v1542_v17 }
 0x196   :  { %v437_v21 = vpop.xlane.xlu0 %436 }
 0x197   :  { %v438_v23 = vmax.f32 %v435_v20, %v437_v21 }
 0x199   :  { %v439_v24 = vsub.f32 %v435_v20, %v438_v23  ;;  %664 = vst.msk [vmem:[#allocation2] sm:$0xff] %vm102_vm0, %v438_v23  ;;  %444 = vperm.xlu0 %783, %v438_v23  }
 0x19b   :  { %v440_v44 = vmul.f32 1.442695, %v439_v24 }
 0x1a0   :  { %v676_v50 = vld [vmem:[#allocation2] sm:$0xff] }
 0x20b   :  { %v445_v25 = vpop.permute.xlu0 %444 }
 0x20c   :  { %v447_v27 = vsub.f32 %v1542_v17, %v445_v25 }
 0x20e   :  { %v448_v28 = vmul.f32 1.442695, %v447_v27 }
 0x210   :  { %786 = vpow2.f32 %v448_v28 }
 0x211   :  { %788 = vpow2.f32 %v440_v44 }
 0x216   :  { %v787_v29 = vpop.eup %786 }
 0x217   :  { %452 = vadd.xlane.f32.xlu1 %v787_v29  ;;  %488 = vmatmul.f32.vlgmr.msra.gmra.mxu1 %v787_v29  ;;  %v459_v31 = vrot.slane %v787_v29, 2  ;;  %v460_v32 = vrot.slane %v787_v29, 3  ;;  %v461_v33 = vrot.slane %v787_v29, 4  ;;  %v458_v37 = vrot.slane %v787_v29, 1  ;;  %v789_v51 = vpop.eup %788 }
 0x218   :  { %572 = vmatpush.msra.mxu1 %v1775_v34  ;;  %v463_v39 = vrot.slane %v787_v29, 6  ;;  %v464_v40 = vrot.slane %v787_v29, 7  ;;  %v462_v55 = vrot.slane %v787_v29, 5  ;;  %v451_v57 = vmul.f32 %v789_v51, %v450_v56 }
 0x219   :  { %528 = vmatmul.f32.vlgmr.msra.gmra.mxu2 %v459_v31  ;;  %548 = vmatmul.f32.vlgmr.msra.gmra.mxu3 %v460_v32 }
 0x21a   :  { %568 = vmatmul.f32.vlgmr.msra.gmra.mxu0 %v461_v33  ;;  %573 = vmatpush.msra.mxu1 %v1776_v35 }
 0x21c   :  { %574 = vmatpush.msra.mxu1 %v1777_v36 }
 0x21e   :  { %575 = vmatpush.msra.mxu1 %v1778_v38 }
 0x21f   :  { %508 = vmatmul.f32.vlgmr.msrb.gmra.mxu1 %v458_v37 }
 0x220   :  { %576 = vmatpush.msra.mxu1 %v1779_v41 }
 0x221   :  { %608 = vmatmul.f32.vlgmr.msrb.gmra.mxu2 %v463_v39  ;;  %628 = vmatmul.f32.vlgmr.msrb.gmra.mxu3 %v464_v40 }
 0x222   :  { %577 = vmatpush.msra.mxu1 %v1780_v42 }
 0x224   :  { %578 = vmatpush.msra.mxu1 %v1781_v43 }
 0x226   :  { %579 = vmatpush.msra.mxu1 %v1782_v45 }
 0x228   :  { %580 = vmatpush.msra.mxu1 %v1783_v46 }
 0x22a   :  { %581 = vmatpush.msra.mxu1 %v1784_v47  ;;  %v710_v47 = vld [vmem:[#allocation8] sm:$0xff] }
 0x22c   :  { %582 = vmatpush.msra.mxu1 %v1785_v48 }
 0x22e   :  { %583 = vmatpush.msra.mxu1 %v1786_v49 }
 0x230   :  { %584 = vmatpush.msra.mxu1 %v1787_v52  ;;  %635 = vperm.xlu1 %784, %v789_v51  }
 0x232   :  { %585 = vmatpush.msra.mxu1 %v1788_v53 }
 0x234   :  { %586 = vmatpush.msra.mxu1 %v1789_v54 }
 0x236   :  { %587 = vmatpush.msra.mxu1 %v1414_v60  ;;  %v705_v60 = vld [vmem:[#allocation10 + $0x58] sm:$0xff] }
 0x237   :  { %588 = vmatmul.f32.vlgmr.msra.gmra.mxu1 %v462_v55  ;;  %715 = vmatpush.xpose.msrb.mxu0 %v705_v60 }
 0x23b   :  { %716 = vmatpush.xpose.msrb.mxu0 %v704_v22 }
 0x23f   :  { %717 = vmatpush.xpose.msrb.mxu0 %v703_v0 }
 0x243   :  { %718 = vmatpush.xpose.msrb.mxu0 %v702_v1 }
 0x247   :  { %719 = vmatpush.xpose.msrb.mxu0 %v701_v2 }
 0x24b   :  { %720 = vmatpush.xpose.msrb.mxu0 %v700_v14 }
 0x24f   :  { %721 = vmatpush.xpose.msrb.mxu0 %v699_v3 }
 0x253   :  { %722 = vmatpush.xpose.msrb.mxu0 %v698_v4 }
 0x257   :  { %723 = vmatpush.xpose.msrb.mxu0 %v697_v5 }
 0x25b   :  { %724 = vmatpush.xpose.msrb.mxu0 %v696_v6 }
 0x25f   :  { %725 = vmatpush.xpose.msrb.mxu0 %v695_v7 }
 0x263   :  { %726 = vmatpush.xpose.msrb.mxu0 %v694_v9 }
 0x28a   :  { %v453_v58 = vpop.xlane.xlu1 %452 }
 0x28b   :  { %v454_v59 = vadd.f32 %v453_v58, %v451_v57 }
 0x28d   :  { %456 = vst.msk [vmem:[#allocation3] sm:$0xff] %vm102_vm0, %v454_v59 }
 0x294   :  { %v673_v61 = vld [vmem:[#allocation3] sm:$0xff]  ;;  %v489_v8 = vpop.f32.mrf.mxu1 }
 0x295   :  { %790 = vrcp.f32 %v673_v61 }
 0x297   :  { %v569_v21 = vpop.f32.mrf.mxu0 }
 0x298   :  { %v653_v27 = vrot.slane %v569_v21, 4 }
 0x29b   :  { %v791_v30 = vpop.eup %790 }
 0x29c   :  { %687 = vperm.xlu2 %785, %v791_v30   ;;  %v509_v11 = vpop.f32.mrf.mxu1  ;;  %v529_v13 = vpop.f32.mrf.mxu2 }
 0x29d   :  { %v647_v12 = vrot.slane %v509_v11, 7  ;;  %v649_v15 = vrot.slane %v529_v13, 6  ;;  %v549_v18 = vpop.f32.mrf.mxu3 }
 0x29e   :  { %v651_v23 = vrot.slane %v549_v18, 5 }
 0x29f   :  { %v648_v16 = vsel %vm413_vm1, %v647_v12, %v489_v8 }
 0x2a0   :  { %v650_v19 = vsel %vm416_vm2, %v649_v15, %v648_v16 }
 0x2a1   :  { %v652_v24 = vsel %vm419_vm3, %v651_v23, %v650_v19 }
 0x2a2   :  { %v654_v29 = vsel %vm422_vm4, %v653_v27, %v652_v24  ;;  %v636_v35 = vpop.permute.xlu1 %635 }
 0x2a3   :  { %v638_v38 = vmul.f32 0.0, %v636_v35 }
 0x2a4   :  { %679 = vperm.xlu2 %785, %v676_v50   ;;  %v609_v28 = vpop.f32.mrf.mxu2 }
 0x2a5   :  { %v657_v32 = vrot.slane %v609_v28, 2  ;;  %v629_v33 = vpop.f32.mrf.mxu3 }
 0x2a6   :  { %v659_v36 = vrot.slane %v629_v33, 1 }
 0x2b4   :  { %v589_v20 = vpop.f32.mrf.mxu1 }
 0x2b5   :  { %v655_v25 = vrot.slane %v589_v20, 3 }
 0x2b7   :  { %v656_v31 = vsel %vm425_vm5, %v655_v25, %v654_v29 }
 0x2b8   :  { %v658_v34 = vsel %vm428_vm6, %v657_v32, %v656_v31 }
 0x2b9   :  { %v660_v37 = vsel %vm431_vm7, %v659_v36, %v658_v34 }
 0x2ba   :  { %v662_v39 = vadd.f32 %v660_v37, %v638_v38 }
 0x2f6   :  { %v688_v40 = vpop.permute.xlu2 %687 }
 0x2f7   :  { %v693_v41 = vmul.f32 %v688_v40, %v662_v39 }
 0x2f9   :  { %727 = vmatmul.f32.vlgmr.msrb.gmra.mxu0 %v693_v41 }
 0x2fe   :  { %v680_v42 = vpop.permute.xlu2 %679 }
 0x2ff   :  { %v682_v43 = vsub.f32 %v1542_v17, %v680_v42 }
 0x301   :  { %v683_v44 = vmul.f32 1.442695, %v682_v43 }
 0x303   :  { %792 = vpow2.f32 %v683_v44 }
 0x309   :  { %v793_v45 = vpop.eup %792 }
 0x30a   :  { %v690_v46 = vmul.f32 %v793_v45, %v688_v40 }
 0x30c   :  { %691 = vst [vmem:[#allocation15] sm:$0xff] %v690_v46 }
 0x30d   :  { %754 = dma.vmem_to_hbm [thread:$0]  %s750_s4, 128, %s752_s25, [#allocation16]  }
 0x376   :  { %v728_v48 = vpop.f32.mrf.mxu0 }
 0x377   :  { %v729_v49 = vadd.f32 %v728_v48, %v710_v47 }
 0x379   :  { %794 = vtanh.f32 %v729_v49 }
 0x37f   :  { %v795_v17 = vpop.eup %794 }
 0x380   :  { %732 = vst [vmem:[#allocation14] sm:$0xff] %v795_v17 }
 0x381   :  { %743 = dma.vmem_to_hbm [thread:$0]  %s739_s27, 128, %s741_s30, [#allocation7]  }
 0x382   :  { %970 = dma.done.wait [#allocation7], 128  }
 0x383   :  { %971 = vsyncadd [#allocation7], 4294967168 }
 0x384   :  { %972 = dma.done.wait [#allocation16], 128  }
 0x385   :  { %973 = vsyncadd [#allocation16], 4294967168 }
 0x386   :  { %763 = vsyncpa [#allocation6], 1 }
 0x387   :  { %764 = vsyncpa [#allocation9], 1 }
 0x388   :  { %765 = vsyncpa [#allocation12], 1 }
 0x389   :  { %766 = vsyncpa [#allocation7], 1 }
 0x38a   :  { %767 = vsyncpa [#allocation16], 1 }

</bundles_post_ra>
